<compile_context>
chip_gen: v7x
topology: tpu7x:2x2x1
jax: 0.10.0
libtpu: 0.0.40
codegen_flags: <defaults>
</compile_context>

<pallas_src>
import functools

import jax
import jax.numpy as jnp
from jax.experimental import pallas as pl
from jax.experimental.pallas import tpu as pltpu


# ---------------------------------------------------------------------------
# Shared-MLP tower (Conv1d k=1 + folded BN + ReLU, eval mode)
# ---------------------------------------------------------------------------
def _mlp(x, w1_ref, b1_ref, w2_ref, b2_ref, w3_ref, b3_ref):
    """One (TILE_N, 3) f32 tile -> (TILE_N, 128) f32."""
    w1 = w1_ref[...]                                          # (3, 64) f32
    # Layer 1: K=3 starves the MXU -> three VPU fused multiply-adds.
    h1 = (x[:, 0:1] * w1[0:1, :]
          + x[:, 1:2] * w1[1:2, :]
          + x[:, 2:3] * w1[2:3, :]) + b1_ref[...]
    h1 = jnp.maximum(h1, 0.0)                                 # (TILE_N, 64)
    # Layers 2/3: bf16 MXU matmuls, f32 accumulation, f32 bias+ReLU epilogue.
    h2 = jnp.dot(h1.astype(jnp.bfloat16), w2_ref[...],
                 preferred_element_type=jnp.float32) + b2_ref[...]
    h2 = jnp.maximum(h2, 0.0)                                 # (TILE_N, 128)
    h3 = jnp.dot(h2.astype(jnp.bfloat16), w3_ref[...],
                 preferred_element_type=jnp.float32) + b3_ref[...]
    return jnp.maximum(h3, 0.0)                               # (TILE_N, 128)


def _sublane_partial_max(h3, tile_n):
    """(tile_n,128) -> (8,128) partial max.  When tile_n % 8 == 0 this is a
    VPU-only reduce across vregs (no XLU cross-sublane work per tile)."""
    if tile_n % 8 == 0:
        return jnp.max(h3.reshape(tile_n // 8, 8, 128), axis=0)
    return jnp.broadcast_to(jnp.max(h3, axis=0, keepdims=True), (8, 128))


def _mask_rows(h3, tile_idx, tile_n, n_points):
    """Exclude padded (out-of-bounds) rows of the last tile from the max."""
    row = tile_idx * tile_n + jax.lax.broadcasted_iota(jnp.int32, (tile_n, 1), 0)
    return jnp.where(row < n_points, h3, -jnp.inf)


# ---------------------------------------------------------------------------
# Kernels
# ---------------------------------------------------------------------------
def spnet_full_kernel(x_ref, w1_ref, b1_ref, w2_ref, b2_ref, w3_ref, b3_ref,
                      out_ref, gmax8_sc, gmax1_sc, *, n_points, tile_n,
                      out_dtype):
    """Pass 0: MLP + stream lanes 0:128 + reduce max.  Pass 1: lanes 128:256."""
    p = pl.program_id(1)   # 0 = compute/stream/reduce, 1 = write gmax half
    n = pl.program_id(2)   # point-tile index

    @pl.when(jnp.logical_and(p == 0, n == 0))
    def _():
        gmax8_sc[...] = jnp.full_like(gmax8_sc, -jnp.inf)

    @pl.when(p == 0)
    def _():
        h3 = _mlp(x_ref[0], w1_ref, b1_ref, w2_ref, b2_ref, w3_ref, b3_ref)
        # Stream the per-point half now: this block maps to lanes 0:128 of the
        # output, so the write DMA overlaps with the next tile's compute.
        out_ref[0] = h3.astype(out_dtype)
        if n_points % tile_n != 0:          # masked last tile (cdiv grid)
            h3 = _mask_rows(h3, n, tile_n, n_points)
        gmax8_sc[...] = jnp.maximum(gmax8_sc[...],
                                    _sublane_partial_max(h3, tile_n))

    @pl.when(jnp.logical_and(p == 1, n == 0))
    def _():
        # One cross-sublane collapse per batch.
        gmax1_sc[...] = jnp.max(gmax8_sc[...], axis=0, keepdims=True)

    @pl.when(p == 1)
    def _():
        # This block maps to lanes 128:256 -> pure DMA-bound broadcast write.
        out_ref[0] = jnp.broadcast_to(gmax1_sc[...],
                                      (tile_n, 128)).astype(out_dtype)


def spnet_global_kernel(x_ref, w1_ref, b1_ref, w2_ref, b2_ref, w3_ref, b3_ref,
                        gmax_ref, gmax8_sc, *, n_points, tile_n):
    """global_feat path: only the (1,1,128) per-batch max is ever written."""
    n = pl.program_id(1)

    @pl.when(n == 0)
    def _():
        gmax8_sc[...] = jnp.full_like(gmax8_sc, -jnp.inf)

    h3 = _mlp(x_ref[0], w1_ref, b1_ref, w2_ref, b2_ref, w3_ref, b3_ref)
    if n_points % tile_n != 0:
        h3 = _mask_rows(h3, n, tile_n, n_points)
    gmax8_sc[...] = jnp.maximum(gmax8_sc[...], _sublane_partial_max(h3, tile_n))

    @pl.when(n == pl.num_programs(1) - 1)
    def _():
        gmax_ref[0] = jnp.max(gmax8_sc[...], axis=0, keepdims=True)


# ---------------------------------------------------------------------------
# Wrapper
# ---------------------------------------------------------------------------
def _const_spec(arr):
    ndim = arr.ndim
    return pl.BlockSpec(arr.shape, lambda *_: (0,) * ndim)   # VMEM-resident


def _pick_tile_n(n, cap=2048):
    # Big tiles amortize the ~0.35us per-grid-step overhead and keep the MXU
    # fed (review: 128 -> 512+ moves ~30% -> ~85% of HBM roofline).  The cap
    # keeps the double-buffered working set well under 32 MiB on every
    # generation (v7x VMEM is 64 MiB).  N <= cap -> one full-extent tile.
    return n if n <= cap else cap


_VMEM_LIMIT = 32 * 1024 * 1024


@functools.partial(jax.jit, static_argnames=("global_feat", "tile_n", "out_dtype"))
def spnet_forward(x, params, global_feat=False, tile_n=None,
                  out_dtype=jnp.float32):
    """x: (B, N, 3) f32 -> (B, N, 256) out_dtype, or (B, 128) if global_feat.

    out_dtype=jnp.bfloat16 halves the HBM write stream of the (write-bound)
    full path; default f32 matches the PyTorch module.
    """
    B, N, C = x.shape
    assert C == 3, C
    if tile_n is None:
        tile_n = _pick_tile_n(N)
    assert 0 < tile_n <= N, (tile_n, N)
    # Non-full-extent blocks must respect sublane tiling (8 for f32, 16 for
    # bf16 output blocks); 16 is safe for both.
    assert tile_n == N or tile_n % 16 == 0, tile_n
    nt = pl.cdiv(N, tile_n)

    (w1, b1), (w2, b2), (w3, b3) = params
    w2 = w2.astype(jnp.bfloat16)   # MXU inputs bf16, f32 accumulation
    w3 = w3.astype(jnp.bfloat16)
    weights = (w1, b1, w2, b2, w3, b3)
    weight_specs = [_const_spec(a) for a in weights]

    flops = int(2 * B * N * (3 * 64 + 64 * 128 + 128 * 128))
    in_bytes = int(B * N * 3 * 4) + int(sum(int(a.size) * a.dtype.itemsize
                                            for a in weights))

    if global_feat:
        g = pl.pallas_call(
            functools.partial(spnet_global_kernel, n_points=N, tile_n=tile_n),
            out_shape=jax.ShapeDtypeStruct((B, 1, 128), jnp.float32),
            grid_spec=pltpu.PrefetchScalarGridSpec(
                num_scalar_prefetch=0,
                grid=(B, nt),
                in_specs=[pl.BlockSpec((1, tile_n, 3),
                                       lambda b, n: (b, n, 0))] + weight_specs,
                out_specs=pl.BlockSpec((1, 1, 128), lambda b, n: (b, 0, 0)),
                scratch_shapes=[pltpu.VMEM((8, 128), jnp.float32)],
            ),
            compiler_params=pltpu.CompilerParams(
                dimension_semantics=("parallel", "arbitrary"),
                vmem_limit_bytes=_VMEM_LIMIT),
            cost_estimate=pl.CostEstimate(
                flops=flops, transcendentals=0,
                bytes_accessed=in_bytes + int(B * 128 * 4)),
        )(x, *weights)
        return g[:, 0, :].astype(out_dtype)

    out_itemsize = int(jnp.dtype(out_dtype).itemsize)
    out = pl.pallas_call(
        functools.partial(spnet_full_kernel, n_points=N, tile_n=tile_n,
                          out_dtype=out_dtype),
        out_shape=jax.ShapeDtypeStruct((B, N, 256), out_dtype),
        grid_spec=pltpu.PrefetchScalarGridSpec(
            num_scalar_prefetch=0,
            grid=(B, 2, nt),
            # x is only needed in pass 0; pin it to tile 0 during pass 1 so no
            # redundant input DMAs are issued while the broadcast half streams.
            in_specs=[pl.BlockSpec((1, tile_n, 3),
                                   lambda b, p, n: (b, n * (1 - p), 0))]
                     + weight_specs,
            # Lane-blocked output: pass 0 writes lane-block 0 (per-point
            # features), pass 1 writes lane-block 1 (broadcast global max).
            # Every block is written exactly once.
            out_specs=pl.BlockSpec((1, tile_n, 128), lambda b, p, n: (b, n, p)),
            scratch_shapes=[pltpu.VMEM((8, 128), jnp.float32),   # partial max
                            pltpu.VMEM((1, 128), jnp.float32)],  # collapsed
        ),
        compiler_params=pltpu.CompilerParams(
            dimension_semantics=("parallel", "arbitrary", "arbitrary"),
            vmem_limit_bytes=_VMEM_LIMIT),
        cost_estimate=pl.CostEstimate(
            flops=flops, transcendentals=0,
            bytes_accessed=in_bytes + int(B * N * 256 * out_itemsize)),
    )(x, *weights)
    return out


# ---------------------------------------------------------------------------
# Parameters (Conv1d k=1 + folded BatchNorm, eval mode) and reference
# ---------------------------------------------------------------------------
def fold_bn(w, b, gamma, beta, mean, var, eps=1e-5):
    """Fold Conv1d(k=1) + BatchNorm1d (inference) into one linear layer."""
    scale = gamma / jnp.sqrt(var + eps)                       # (C_out,)
    w_f = w * scale[None, :]
    b_f = (b - mean) * scale + beta
    return w_f, b_f.reshape(1, -1)


def make_params(key):
    dims = [(3, 64), (64, 128), (128, 128)]
    keys = jax.random.split(key, 6 * len(dims))
    params = []
    for i, (cin, cout) in enumerate(dims):
        k = keys[6 * i:6 * i + 6]
        limit = 1.0 / (cin ** 0.5)   # PyTorch Conv1d default uniform bound
        w = jax.random.uniform(k[0], (cin, cout), jnp.float32, -limit, limit)
        b = jax.random.uniform(k[1], (cout,), jnp.float32, -limit, limit)
        gamma = 1.0 + 0.1 * jax.random.normal(k[2], (cout,), jnp.float32)
        beta = 0.1 * jax.random.normal(k[3], (cout,), jnp.float32)
        mean = 0.1 * jax.random.normal(k[4], (cout,), jnp.float32)
        var = jax.random.uniform(k[5], (cout,), jnp.float32, 0.5, 1.5)
        params.append(fold_bn(w, b, gamma, beta, mean, var))
    return params


def spnet_reference(x, params, global_feat=False):
    """Pure-JAX reference (eval semantics), mirroring the kernel's mixed
    precision (f32 layer-1 FMAs, bf16-input / f32-accumulate layers 2 & 3)."""
    (w1, b1), (w2, b2), (w3, b3) = params
    h1 = (x[..., 0:1] * w1[0, :] + x[..., 1:2] * w1[1, :]
          + x[..., 2:3] * w1[2, :]) + b1
    h1 = jnp.maximum(h1, 0.0)
    h2 = jnp.maximum(
        jnp.einsum("bnc,cd->bnd", h1.astype(jnp.bfloat16),
                   w2.astype(jnp.bfloat16),
                   preferred_element_type=jnp.float32) + b2, 0.0)
    h3 = jnp.maximum(
        jnp.einsum("bnc,cd->bnd", h2.astype(jnp.bfloat16),
                   w3.astype(jnp.bfloat16),
                   preferred_element_type=jnp.float32) + b3, 0.0)
    g = jnp.max(h3, axis=1)
    if global_feat:
        return g
    return jnp.concatenate(
        [h3, jnp.broadcast_to(g[:, None, :], h3.shape)], axis=-1)


if __name__ == "__main__":
    key = jax.random.PRNGKey(0)
    kx, kp = jax.random.split(key)
    params = make_params(kp)
    B = 2

    def run_case(N, tile_n, global_feat, out_dtype, atol, rtol):
        x = jax.random.normal(jax.random.fold_in(kx, N), (B, N, 3), jnp.float32)
        out = jax.block_until_ready(
            spnet_forward(x, params, global_feat=global_feat,
                          tile_n=tile_n, out_dtype=out_dtype))
        ref = spnet_reference(x, params, global_feat=global_feat)
        assert out.shape == ref.shape, (out.shape, ref.shape)
        assert out.dtype == jnp.dtype(out_dtype), out.dtype
        out_f32 = out.astype(jnp.float32)
        err = float(jnp.max(jnp.abs(out_f32 - ref)))
        assert jnp.allclose(out_f32, ref, atol=atol, rtol=rtol), err

    # Multi-tile, divisible N (4 point tiles of 128).
    run_case(512, 128, False, jnp.float32, 5e-3, 5e-3)
    run_case(512, 128, True, jnp.float32, 5e-3, 5e-3)
    # Non-divisible N: cdiv grid + masked last tile (116 valid rows).
    run_case(500, 128, False, jnp.float32, 5e-3, 5e-3)
    run_case(500, 128, True, jnp.float32, 5e-3, 5e-3)
    # bf16 output fast path (halves the dominant HBM write stream).
    run_case(512, 128, False, jnp.bfloat16, 5e-2, 2e-2)

    print("KERNEL_OK")
</pallas_src>

<mosaic_0001>
module attributes {stable_mosaic.version = 11 : i64} {
  func.func @spnet_full_kernel(%arg0: i32, %arg1: i32, %arg2: i32, %arg3: memref<1x128x3xf32, #tpu.memory_space<vmem>>, %arg4: memref<3x64xf32, #tpu.memory_space<vmem>>, %arg5: memref<1x64xf32, #tpu.memory_space<vmem>>, %arg6: memref<64x128xbf16, #tpu.memory_space<vmem>>, %arg7: memref<1x128xf32, #tpu.memory_space<vmem>>, %arg8: memref<128x128xbf16, #tpu.memory_space<vmem>>, %arg9: memref<1x128xf32, #tpu.memory_space<vmem>>, %arg10: memref<1x128x128xf32, #tpu.memory_space<vmem>>, %arg11: memref<8x128xf32, #tpu.memory_space<vmem>>, %arg12: memref<1x128xf32, #tpu.memory_space<vmem>>) attributes {dimension_semantics = [#tpu.dimension_semantics<parallel>, #tpu.dimension_semantics<arbitrary>, #tpu.dimension_semantics<arbitrary>], iteration_bounds = array<i64: 2, 2, 4>, scalar_prefetch = 0 : i64, scratch_operands = 2 : i64, tpu.core_type = #tpu.core_type<tc>, window_params = [{transform_indices = @transform_0, window_bounds = array<i64: 1, 128, 3>}, {pipeline_mode = #tpu.pipeline_mode<synchronous>, transform_indices = @transform_1, window_bounds = array<i64: 3, 64>}, {pipeline_mode = #tpu.pipeline_mode<synchronous>, transform_indices = @transform_2, window_bounds = array<i64: 1, 64>}, {pipeline_mode = #tpu.pipeline_mode<synchronous>, transform_indices = @transform_3, window_bounds = array<i64: 64, 128>}, {pipeline_mode = #tpu.pipeline_mode<synchronous>, transform_indices = @transform_4, window_bounds = array<i64: 1, 128>}, {pipeline_mode = #tpu.pipeline_mode<synchronous>, transform_indices = @transform_5, window_bounds = array<i64: 128, 128>}, {pipeline_mode = #tpu.pipeline_mode<synchronous>, transform_indices = @transform_6, window_bounds = array<i64: 1, 128>}, {transform_indices = @transform_7, window_bounds = array<i64: 1, 128, 128>}]} {
    %c0_i32 = arith.constant 0 : i32
    %0 = arith.cmpi eq, %arg1, %c0_i32 : i32
    %c0_i32_0 = arith.constant 0 : i32
    %1 = arith.cmpi eq, %arg2, %c0_i32_0 : i32
    %2 = arith.andi %0, %1 : i1
    %3 = arith.extui %2 : i1 to i32
    %c0_i32_1 = arith.constant 0 : i32
    %4 = arith.cmpi ne, %3, %c0_i32_1 : i32
    scf.if %4 {
      %cst = arith.constant 0xFF800000 : f32
      %16 = vector.broadcast %cst : f32 to vector<8x128xf32>
      %c0 = arith.constant 0 : index
      %c0_8 = arith.constant 0 : index
      %17 = vector.load %arg11[%c0, %c0_8] : memref<8x128xf32, #tpu.memory_space<vmem>>, vector<8x128xf32>
      tpu.vector_store %arg11[%c0, %c0_8], %16 {strides = array<i32>} : memref<8x128xf32, #tpu.memory_space<vmem>>, vector<8x128xf32>,
    } else {
    }
    %c0_i32_2 = arith.constant 0 : i32
    %5 = arith.cmpi eq, %arg1, %c0_i32_2 : i32
    %6 = arith.extui %5 : i1 to i32
    %c0_i32_3 = arith.constant 0 : i32
    %7 = arith.cmpi ne, %6, %c0_i32_3 : i32
    scf.if %7 {
      %c0 = arith.constant 0 : index
      %c0_8 = arith.constant 0 : index
      %c0_9 = arith.constant 0 : index
      %16 = vector.load %arg3[%c0, %c0_8, %c0_9] : memref<1x128x3xf32, #tpu.memory_space<vmem>>, vector<1x128x3xf32>
      %17 = vector.shape_cast %16 : vector<1x128x3xf32> to vector<128x3xf32>
      %c0_10 = arith.constant 0 : index
      %c0_11 = arith.constant 0 : index
      %18 = vector.load %arg4[%c0_10, %c0_11] : memref<3x64xf32, #tpu.memory_space<vmem>>, vector<3x64xf32>
      %19 = vector.extract_strided_slice %17 {offsets = [0, 0], sizes = [128, 1], strides = [1, 1]} : vector<128x3xf32> to vector<128x1xf32>
      %20 = vector.extract_strided_slice %18 {offsets = [0, 0], sizes = [1, 64], strides = [1, 1]} : vector<3x64xf32> to vector<1x64xf32>
      %21 = vector.broadcast %19 : vector<128x1xf32> to vector<128x64xf32>
      %22 = vector.broadcast %20 : vector<1x64xf32> to vector<128x64xf32>
      %23 = arith.mulf %21, %22 : vector<128x64xf32>
      %24 = vector.extract_strided_slice %17 {offsets = [0, 1], sizes = [128, 1], strides = [1, 1]} : vector<128x3xf32> to vector<128x1xf32>
      %25 = vector.extract_strided_slice %18 {offsets = [1, 0], sizes = [1, 64], strides = [1, 1]} : vector<3x64xf32> to vector<1x64xf32>
      %26 = vector.broadcast %24 : vector<128x1xf32> to vector<128x64xf32>
      %27 = vector.broadcast %25 : vector<1x64xf32> to vector<128x64xf32>
      %28 = arith.mulf %26, %27 : vector<128x64xf32>
      %29 = arith.addf %23, %28 : vector<128x64xf32>
      %30 = vector.extract_strided_slice %17 {offsets = [0, 2], sizes = [128, 1], strides = [1, 1]} : vector<128x3xf32> to vector<128x1xf32>
      %31 = vector.extract_strided_slice %18 {offsets = [2, 0], sizes = [1, 64], strides = [1, 1]} : vector<3x64xf32> to vector<1x64xf32>
      %32 = vector.broadcast %30 : vector<128x1xf32> to vector<128x64xf32>
      %33 = vector.broadcast %31 : vector<1x64xf32> to vector<128x64xf32>
      %34 = arith.mulf %32, %33 : vector<128x64xf32>
      %35 = arith.addf %29, %34 : vector<128x64xf32>
      %c0_12 = arith.constant 0 : index
      %c0_13 = arith.constant 0 : index
      %36 = vector.load %arg5[%c0_12, %c0_13] : memref<1x64xf32, #tpu.memory_space<vmem>>, vector<1x64xf32>
      %37 = vector.broadcast %36 : vector<1x64xf32> to vector<128x64xf32>
      %38 = arith.addf %35, %37 : vector<128x64xf32>
      %cst = arith.constant 0.000000e+00 : f32
      %39 = vector.broadcast %cst : f32 to vector<128x64xf32>
      %40 = arith.maximumf %38, %39 : vector<128x64xf32>
      %41 = arith.truncf %40 : vector<128x64xf32> to vector<128x64xbf16>
      %c0_14 = arith.constant 0 : index
      %c0_15 = arith.constant 0 : index
      %42 = vector.load %arg6[%c0_14, %c0_15] : memref<64x128xbf16, #tpu.memory_space<vmem>>, vector<64x128xbf16>
      %cst_16 = arith.constant dense<0.000000e+00> : vector<128x128xf32>
      %43 = tpu.matmul %41, %42, %cst_16 {dimension_numbers = #tpu.dot_dimension_numbers<[1], [0], [0], [1], [0, 0, 1, 1], [], []>} : vector<128x64xbf16>, vector<64x128xbf16>, vector<128x128xf32> -> vector<128x128xf32>
      %c0_17 = arith.constant 0 : index
      %c0_18 = arith.constant 0 : index
      %44 = vector.load %arg7[%c0_17, %c0_18] : memref<1x128xf32, #tpu.memory_space<vmem>>, vector<1x128xf32>
      %45 = vector.broadcast %44 : vector<1x128xf32> to vector<128x128xf32>
      %46 = arith.addf %43, %45 : vector<128x128xf32>
      %cst_19 = arith.constant 0.000000e+00 : f32
      %47 = vector.broadcast %cst_19 : f32 to vector<128x128xf32>
      %48 = arith.maximumf %46, %47 : vector<128x128xf32>
      %49 = arith.truncf %48 : vector<128x128xf32> to vector<128x128xbf16>
      %c0_20 = arith.constant 0 : index
      %c0_21 = arith.constant 0 : index
      %50 = vector.load %arg8[%c0_20, %c0_21] : memref<128x128xbf16, #tpu.memory_space<vmem>>, vector<128x128xbf16>
      %cst_22 = arith.constant dense<0.000000e+00> : vector<128x128xf32>
      %51 = tpu.matmul %49, %50, %cst_22 {dimension_numbers = #tpu.dot_dimension_numbers<[1], [0], [0], [1], [0, 0, 1, 1], [], []>} : vector<128x128xbf16>, vector<128x128xbf16>, vector<128x128xf32> -> vector<128x128xf32>
      %c0_23 = arith.constant 0 : index
      %c0_24 = arith.constant 0 : index
      %52 = vector.load %arg9[%c0_23, %c0_24] : memref<1x128xf32, #tpu.memory_space<vmem>>, vector<1x128xf32>
      %53 = vector.broadcast %52 : vector<1x128xf32> to vector<128x128xf32>
      %54 = arith.addf %51, %53 : vector<128x128xf32>
      %cst_25 = arith.constant 0.000000e+00 : f32
      %55 = vector.broadcast %cst_25 : f32 to vector<128x128xf32>
      %56 = arith.maximumf %54, %55 : vector<128x128xf32>
      %c0_26 = arith.constant 0 : index
      %c0_27 = arith.constant 0 : index
      %c0_28 = arith.constant 0 : index
      %57 = vector.load %arg10[%c0_26, %c0_27, %c0_28] : memref<1x128x128xf32, #tpu.memory_space<vmem>>, vector<1x128x128xf32>
      %58 = vector.shape_cast %57 : vector<1x128x128xf32> to vector<128x128xf32>
      %59 = vector.shape_cast %56 : vector<128x128xf32> to vector<1x128x128xf32>
      tpu.vector_store %arg10[%c0_26, %c0_27, %c0_28], %59 {strides = array<i32>} : memref<1x128x128xf32, #tpu.memory_space<vmem>>, vector<1x128x128xf32>,
      %c0_29 = arith.constant 0 : index
      %c0_30 = arith.constant 0 : index
      %60 = vector.load %arg11[%c0_29, %c0_30] : memref<8x128xf32, #tpu.memory_space<vmem>>, vector<8x128xf32>
      %61 = vector.shape_cast %56 : vector<128x128xf32> to vector<16x8x128xf32>
      %cst_31 = arith.constant dense<0xFF800000> : vector<8x128xf32>
      %62 = vector.multi_reduction <maximumf>, %61, %cst_31 [0] : vector<16x8x128xf32> to vector<8x128xf32>
      %63 = arith.maximumf %60, %62 : vector<8x128xf32>
      %c0_32 = arith.constant 0 : index
      %c0_33 = arith.constant 0 : index
      %64 = vector.load %arg11[%c0_32, %c0_33] : memref<8x128xf32, #tpu.memory_space<vmem>>, vector<8x128xf32>
      tpu.vector_store %arg11[%c0_32, %c0_33], %63 {strides = array<i32>} : memref<8x128xf32, #tpu.memory_space<vmem>>, vector<8x128xf32>,
    } else {
    }
    %c1_i32 = arith.constant 1 : i32
    %8 = arith.cmpi eq, %arg1, %c1_i32 : i32
    %c0_i32_4 = arith.constant 0 : i32
    %9 = arith.cmpi eq, %arg2, %c0_i32_4 : i32
    %10 = arith.andi %8, %9 : i1
    %11 = arith.extui %10 : i1 to i32
    %c0_i32_5 = arith.constant 0 : i32
    %12 = arith.cmpi ne, %11, %c0_i32_5 : i32
    scf.if %12 {
      %c0 = arith.constant 0 : index
      %c0_8 = arith.constant 0 : index
      %16 = vector.load %arg11[%c0, %c0_8] : memref<8x128xf32, #tpu.memory_space<vmem>>, vector<8x128xf32>
      %cst = arith.constant dense<0xFF800000> : vector<128xf32>
      %17 = vector.multi_reduction <maximumf>, %16, %cst [0] : vector<8x128xf32> to vector<128xf32>
      %18 = vector.shape_cast %17 : vector<128xf32> to vector<1x128xf32>
      %c0_9 = arith.constant 0 : index
      %c0_10 = arith.constant 0 : index
      %19 = vector.load %arg12[%c0_9, %c0_10] : memref<1x128xf32, #tpu.memory_space<vmem>>, vector<1x128xf32>
      tpu.vector_store %arg12[%c0_9, %c0_10], %18 {strides = array<i32>} : memref<1x128xf32, #tpu.memory_space<vmem>>, vector<1x128xf32>,
    } else {
    }
    %c1_i32_6 = arith.constant 1 : i32
    %13 = arith.cmpi eq, %arg1, %c1_i32_6 : i32
    %14 = arith.extui %13 : i1 to i32
    %c0_i32_7 = arith.constant 0 : i32
    %15 = arith.cmpi ne, %14, %c0_i32_7 : i32
    scf.if %15 {
      %c0 = arith.constant 0 : index
      %c0_8 = arith.constant 0 : index
      %16 = vector.load %arg12[%c0, %c0_8] : memref<1x128xf32, #tpu.memory_space<vmem>>, vector<1x128xf32>
      %17 = vector.shape_cast %16 : vector<1x128xf32> to vector<1x128xf32>
      %18 = vector.broadcast %17 : vector<1x128xf32> to vector<128x128xf32>
      %c0_9 = arith.constant 0 : index
      %c0_10 = arith.constant 0 : index
      %c0_11 = arith.constant 0 : index
      %19 = vector.load %arg10[%c0_9, %c0_10, %c0_11] : memref<1x128x128xf32, #tpu.memory_space<vmem>>, vector<1x128x128xf32>
      %20 = vector.shape_cast %19 : vector<1x128x128xf32> to vector<128x128xf32>
      %21 = vector.shape_cast %18 : vector<128x128xf32> to vector<1x128x128xf32>
      tpu.vector_store %arg10[%c0_9, %c0_10, %c0_11], %21 {strides = array<i32>} : memref<1x128x128xf32, #tpu.memory_space<vmem>>, vector<1x128x128xf32>,
    } else {
    }
    return
  }
  func.func @transform_0(%arg0: i32, %arg1: i32, %arg2: i32) -> (i32, i32, i32) {
    %c1_i32 = arith.constant 1 : i32
    %0 = arith.subi %c1_i32, %arg1 : i32
    %1 = arith.muli %arg2, %0 : i32
    %c0_i32 = arith.constant 0 : i32
    %c0_i32_0 = arith.constant 0 : i32
    return %arg0, %1, %c0_i32 : i32, i32, i32
  }
  func.func @transform_1(%arg0: i32, %arg1: i32, %arg2: i32) -> (i32, i32) {
    %c0_i32 = arith.constant 0 : i32
    %c0_i32_0 = arith.constant 0 : i32
    %c0_i32_1 = arith.constant 0 : i32
    return %c0_i32, %c0_i32_0 : i32, i32
  }
  func.func @transform_2(%arg0: i32, %arg1: i32, %arg2: i32) -> (i32, i32) {
    %c0_i32 = arith.constant 0 : i32
    %c0_i32_0 = arith.constant 0 : i32
    %c0_i32_1 = arith.constant 0 : i32
    return %c0_i32, %c0_i32_0 : i32, i32
  }
  func.func @transform_3(%arg0: i32, %arg1: i32, %arg2: i32) -> (i32, i32) {
    %c0_i32 = arith.constant 0 : i32
    %c0_i32_0 = arith.constant 0 : i32
    %c0_i32_1 = arith.constant 0 : i32
    return %c0_i32, %c0_i32_0 : i32, i32
  }
  func.func @transform_4(%arg0: i32, %arg1: i32, %arg2: i32) -> (i32, i32) {
    %c0_i32 = arith.constant 0 : i32
    %c0_i32_0 = arith.constant 0 : i32
    %c0_i32_1 = arith.constant 0 : i32
    return %c0_i32, %c0_i32_0 : i32, i32
  }
  func.func @transform_5(%arg0: i32, %arg1: i32, %arg2: i32) -> (i32, i32) {
    %c0_i32 = arith.constant 0 : i32
    %c0_i32_0 = arith.constant 0 : i32
    %c0_i32_1 = arith.constant 0 : i32
    return %c0_i32, %c0_i32_0 : i32, i32
  }
  func.func @transform_6(%arg0: i32, %arg1: i32, %arg2: i32) -> (i32, i32) {
    %c0_i32 = arith.constant 0 : i32
    %c0_i32_0 = arith.constant 0 : i32
    %c0_i32_1 = arith.constant 0 : i32
    return %c0_i32, %c0_i32_0 : i32, i32
  }
  func.func @transform_7(%arg0: i32, %arg1: i32, %arg2: i32) -> (i32, i32, i32) {
    %c0_i32 = arith.constant 0 : i32
    return %arg0, %arg2, %arg1 : i32, i32, i32
  }
}

</mosaic_0001>

<bundles_post_ra>
// kernel: spnet_forward.1
= control target key start
LH: loop header
LB: loop body
LE: loop exit
PB: predicated region body
PF: predicated region fallthrough
CT: control target
= control target key end

     0   :  { %12 = vsyncpa [#allocation5], 0  ;;  %s2144_s0 = inlined_call_operand.vmem [shape: f32[2,512,3], index: 0, kind: input, shape index: {}]   ;;  %s2145_s1 = inlined_call_operand.vmem [shape: f32[3,64], index: 1, kind: input, shape index: {}]   ;;  %s2146_s2 = inlined_call_operand.vmem [shape: f32[1,64], index: 2, kind: input, shape index: {}]   ;;  %s2147_s3 = inlined_call_operand.vmem [shape: bf16[64,128], index: 3, kind: input, shape index: {}]   ;;  %s2148_s4 = inlined_call_operand.vmem [shape: f32[1,128], index: 4, kind: input, shape index: {}]   ;;  %s2149_s5 = inlined_call_operand.vmem [shape: bf16[128,128], index: 5, kind: input, shape index: {}]   ;;  %s2150_s6 = inlined_call_operand.vmem [shape: f32[1,128], index: 6, kind: input, shape index: {}]   ;;  %s2151_s7 = inlined_call_operand.hbm [shape: f32[2,512,256], index: 7, kind: output, shape index: {}]  }
   0x1   :  { %14 = vsyncpa [#allocation5 + $0x1], 0  ;;  %s1687_s24 = smov 0   ;;  %s1689_s25 = smov 0  }
   0x2   :  { %s1691_s26 = smov 0   ;;  %s1693_s27 = smov 0  }
   0x3   :  { %s1695_s28 = smov 0   ;;  %s1697_s29 = smov 0  }
   0x4   :  { %s1699_s30 = smov 0   ;;  %s1701_s8 = smov 0  }
   0x5   :  { %s1703_s9 = smov 0   ;;  %s1705_s10 = smov 0  }
   0x6 LB: > { %2158 = sst [smem:[#allocation7_spill]] %s1625_s30  ;;  %s1255_s11 = sadd.s32 4294967295, %s1637_s10   ;;  %s1637_s10 = sphi %s1705_s10, %s20_s10   ;;  %s1633_s9 = sphi %s1703_s9, %s2171_s9   ;;  %s1629_s8 = sphi %s1701_s8, %s2170_s8   ;;  %s1625_s30 = sphi %s1699_s30, %s2169_s30   ;;  %s1621_s29 = sphi %s1697_s29, %s2168_s29   ;;  %s1617_s28 = sphi %s1695_s28, %s2167_s28   ;;  %s1613_s27 = sphi %s1693_s27, %s2166_s27   ;;  %s1609_s26 = sphi %s1691_s26, %s2174_s26   ;;  %s1605_s25 = sphi %s1689_s25, %s2173_s25   ;;  %s1601_s24 = sphi %s1687_s24, %s2172_s24  }
   0x7   : > { %2159 = sst [smem:[#allocation8_spill]] %s1629_s8  ;;  %s32_s12 = sadd.s32 1, %s1625_s30 }
   0x8   : > { %2160 = sst [smem:[#allocation9_spill]] %s1633_s9  ;;  %p33_p0 = scmp.ge.s32.totalorder %s32_s12, 4 }
   0x9   : > { %s35_s13 = sadd.s32 1, %s1629_s8  ;;  %s1256_s14 = sadd.s32 4294967294, %s1637_s10  }
   0xa   : > { %p218_p1 = scmp.ne.s32.totalorder %s1609_s26, %s1605_s25  ;;  %s2176_s12 = smov (%p33_p0, %s32_s12), 0 }
   0xb   : > { %2161 = sst [smem:[#allocation10_spill]] %s2176_s12  ;;  %s2178_s13 = smov (!%p33_p0, %s35_s13), %s1629_s8 }
   0xc   : > { %s39_s15 = sadd.s32 1, %s1633_s9  ;;  %p219_p2 = scmp.eq.s32.totalorder %s1255_s11, 15 }
   0xd   : > { %p37_p3 = scmp.ge.s32.totalorder %s2178_s13, 2  ;;  %p224_p4 = scmp.ne.s32.totalorder %s1605_s25, %s1601_s24 }
   0xe   : > { %p1749_p5 = por %p219_p2, %p218_p1  ;;  %p225_p6 = scmp.eq.s32.totalorder %s1256_s14, 15 }
   0xf   : > { %s2180_s13 = smov (%p37_p3, %s2178_s13), 0  ;;  %s2182_s15 = smov (!%p37_p3, %s39_s15), %s1633_s9 }
  0x10   : > { %2163 = sst [smem:[#allocation11_spill]] %s2180_s13  ;;  %p1756_p7 = por %p225_p6, %p224_p4 }
  0x11   : > { %p41_p8 = scmp.ge.s32.totalorder %s2182_s15, 2  ;;  %p1259_p9 = scmp.ge.s32.totalorder %s1637_s10, 1 }
  0x12   : > { %s202_s18 = ssub.s32 %s1625_s30, %s2176_s12  ;;  %p278_p10 = scmp.lt.s32.totalorder %s1637_s10, 17 }
  0x13   : > { %s2184_s15 = smov (%p41_p8, %s2182_s15), 0  ;;  %s204_s19 = ssub.s32 %s1629_s8, %s2180_s13 }
  0x14   : > { %2165 = sst [smem:[#allocation12_spill]] %s2184_s15  ;;  %p279_p11 = pnand %p1259_p9, %p278_p10 }
  0x15   : > { %s201_s20 = ssub.s32 %s1633_s9, %s2184_s15  ;;  %s208_s23 = sadd.s32 1, %s1609_s26 }
  0x16   : > { %s203_s21 = sor.u32 %s202_s18, %s201_s20  ;;  %282 = sbr.rel (%p279_p11) target bundleno = 826 (0x33a), region = 48 }
  0x17   : > { %s205_s22 = sor.u32 %s204_s19, %s203_s21  ;;  %s313_s14 = sand.u32 (!%p279_p11), 1, %s1605_s25  }
  0x18   : > { %p206_p12 = scmp.eq.s32.totalorder %s205_s22, 0  ;;  %s316_s13 = ssub.s32 (!%p279_p11), 1, %s1617_s28 }
  0x19   : > { %s1260_s15 = sshll.u32 (!%p279_p11), %s313_s14, 7  ;;  %s317_s18 = smul.u32 (!%p279_p11), %s1613_s27, %s316_s13 }
  0x1a   : > { %s1772_s11 = scalar_select %p206_p12, %s1609_s26, %s208_s23  }
  0x1b   : > { %p319_p13 = scmp.lt.s32.totalorder (!%p279_p11), %s1621_s29, 1  ;;  %s1261_s19 = sshll.u32 (!%p279_p11), %s317_s18, 4 }
  0x1c   : > { %p332_p0 = scmp.eq.s32.totalorder (!%p279_p11), %s1617_s28, 0  ;;  %p321_p1 = scmp.lt.s32.totalorder (!%p279_p11), %s1261_s19, 63 }
  0x1d   : > { %s320_s20 = scalar_select %p319_p13, %s1621_s29, 1 }
  0x1e   : > { %p333_p2 = scmp.eq.s32.totalorder %s1613_s27, 0  ;;  %s2186_s19 = smov (!%p321_p1, %s1261_s19), 63 }
  0x1f   : > { %s1262_s21 = sshll.u32 %s320_s20, 6  ;;  %s1790_s30 = scalar_lea.vmem [#allocation4], %s1260_s15 }
  0x20   : > { %p334_p3 = pnand %p333_p2, %p332_p0  ;;  %s324_s22 = sadd.s32 %s1262_s21, %s2186_s19 }
  0x21   : > { %s1263_s23 = sshll.u32 %s324_s22, 3  ;;  %v1639_v0 = vmov (!%p334_p3), -inf  }
  0x22   : > { %s1788_s8 = scalar_lea.vmem %s2144_s0, %s1263_s23  ;;  %337 = sbr.rel (%p334_p3) target bundleno = 41 (0x29), region = 52  ;;  %338 = vst [vmem:[#allocation2] sm:$0xff] (!%p334_p3), %v1639_v0 }
  0x29 PF: > { %p1264_p4 = scmp.ne.s32.totalorder %s1617_s28, 0 }
  0x2a   : > { %v343_v1 = vld [vmem:[%s1788_s8 + $0x8] sm:$0xff] (!%p1264_p4)  ;;  %v342_v2 = vld [vmem:[%s1788_s8] sm:$0xff] (!%p1264_p4)  ;;  %v1640_v3 = vmov (!%p1264_p4), 2   ;;  %v1641_v4 = vmov (!%p1264_p4), 1   ;;  %v349_v6 = vld [vmem:[%s1788_s8 + $0x38] sm:$0xff] (!%p1264_p4)  ;;  %v1642_v9 = vmov (!%p1264_p4), 0   ;;  %v439_v26 = vlaneseq (!%p1264_p4) }
  0x2b   : > { %341 = sbr.rel (%p1264_p4) target bundleno = 762 (0x2fa), region = 56  ;;  %1496 = vset.pattern.permute.xlu0 (!%p1264_p4), %v1640_v3  ;;  %1492 = vset.pattern.permute.xlu1 (!%p1264_p4), %v1641_v4  ;;  %v346_v5 = vld [vmem:[%s1788_s8 + $0x20] sm:$0xff] (!%p1264_p4)  ;;  %v345_v7 = vld [vmem:[%s1788_s8 + $0x18] sm:$0xff] (!%p1264_p4)  ;;  %v1801_v8 = vld [vmem:[%s1788_s8 + $0x48] sm:$0xff] (!%p1264_p4)  ;;  %vm745_vm0 = vcmask (!%p1264_p4), 523264  }
  0x2c   : > { %564 = vperm.xlu0 (!%p1264_p4), %1496, %v343_v1   ;;  %460 = vperm.xlu1 (!%p1264_p4), %1492, %v342_v2   ;;  %v344_v10 = vld [vmem:[%s1788_s8 + $0x10] sm:$0xff] (!%p1264_p4)  ;;  %v347_v11 = vld [vmem:[%s1788_s8 + $0x28] sm:$0xff] (!%p1264_p4)  ;;  %v354_v13 = vld [vmem:[%s1788_s8 + $0x60] sm:$0xff] (!%p1264_p4)  ;;  %v440_v29 = vshrl.u32 (!%p1264_p4), %v439_v26, 7 }
  0x2d   : > { %v352_v12 = vld [vmem:[%s1788_s8 + $0x50] sm:$0xff] (!%p1264_p4)  ;;  %v1515_v15 = vld [vmem:[%s2147_s3] sm:$0xff] (!%p1264_p4)   ;;  %v1516_v16 = vld [vmem:[%s2147_s3 + $0x8] sm:$0xff] (!%p1264_p4)  }
  0x2e   : > { %v348_v14 = vld [vmem:[%s1788_s8 + $0x30] sm:$0xff] (!%p1264_p4)  ;;  %1326 = vmatprep.subr.bf16.mxu0 (!%p1264_p4), %v1515_v15  ;;  %v1518_v18 = vld [vmem:[%s2147_s3 + $0x18] sm:$0xff] (!%p1264_p4)   ;;  %v355_v19 = vld [vmem:[%s1788_s8 + $0x68] sm:$0xff] (!%p1264_p4)  ;;  %v525_v32 = vsub.s32 (!%p1264_p4), 1, %v440_v29  ;;  %v625_v34 = vsub.s32 (!%p1264_p4), 2, %v440_v29  ;;  %v441_v35 = vsub.s32 (!%p1264_p4), 0, %v440_v29 }
  0x2f   : > { %1327 = vmatpush3.bf16.msra.mxu0 (!%p1264_p4), %v1515_v15  ;;  %v1517_v17 = vld [vmem:[%s2147_s3 + $0x10] sm:$0xff] (!%p1264_p4)   ;;  %v350_v20 = vld [vmem:[%s1788_s8 + $0x40] sm:$0xff] (!%p1264_p4)  ;;  %v357_v22 = vld [vmem:[%s1788_s8 + $0x78] sm:$0xff] (!%p1264_p4) }
  0x30   : > { %576 = vperm.xlu0 (!%p1264_p4), %1496, %v346_v5   ;;  %464 = vperm.xlu1 (!%p1264_p4), %1492, %v343_v1   ;;  %v356_v21 = vld [vmem:[%s1788_s8 + $0x70] sm:$0xff] (!%p1264_p4)  ;;  %v353_v23 = vld [vmem:[%s1788_s8 + $0x58] sm:$0xff] (!%p1264_p4)  ;;  %v358_v33 = vld [vmem:[%s2145_s1] sm:$0x7] (!%p1264_p4) }
  0x31   : > { %1328 = vmatprep.subr.bf16.mxu0 (!%p1264_p4), %v1516_v16  ;;  %v1861_v37 = vld [vmem:[%s2149_s5] sm:$0xff] (!%p1264_p4)   ;;  %v1863_v38 = vrot.slane (!%p1264_p4), %v358_v33, %v525_v32  ;;  %v1869_v40 = vld [vmem:[%s2149_s5 + $0x8] sm:$0xff] (!%p1264_p4)   ;;  %v1872_v41 = vrot.slane (!%p1264_p4), %v358_v33, %v625_v34  ;;  %v1874_v42 = vrot.slane (!%p1264_p4), %v358_v33, %v441_v35  ;;  %v1883_v47 = vld [vmem:[%s2149_s5 + $0x10] sm:$0xff] (!%p1264_p4)  }
  0x32   : > { %1382 = vmatprep.subr.bf16.mxu1 %v1861_v37  ;;  %v1894_v56 = vld [vmem:[%s2146_s2] ss:$0 sm:$0xff]  ;;  %v1899_v57 = vld [vmem:[%s2149_s5 + $0x18] sm:$0xff]  }
  0x33   : > { %1329 = vmatpush3.bf16.msra.mxu0 %v1516_v16  ;;  %1390 = vmatpush3.bf16.msra.mxu1 %v1861_v37  ;;  %v1907_v63 = vld [vmem:[%s2149_s5 + $0x20] sm:$0xff]  }
  0x34   : > { %588 = vperm.xlu0 %1496, %v349_v6   ;;  %1493 = vset.pattern.permute.xlu1 %v1642_v9 }
  0x35   : > { %376 = vperm.xlu1 %1493, %v345_v7   ;;  %1330 = vmatprep.subr.bf16.mxu0 %v1517_v17 }
  0x36   : > { %1383 = vmatprep.subr.bf16.mxu1 %v1869_v40 }
  0x37   : > { %1331 = vmatpush3.bf16.msra.mxu0 %v1517_v17  ;;  %1391 = vmatpush3.bf16.msra.mxu1 %v1869_v40 }
  0x38   : > { %596 = vperm.xlu0 %1496, %v1801_v8   ;;  %1332 = vmatprep.subr.bf16.mxu0 %v1518_v18 }
  0x39   : > { %1494 = vset.pattern.permute.xlu1 %v1641_v4  ;;  %1384 = vmatprep.subr.bf16.mxu1 %v1883_v47 }
  0x3a   : > { %472 = vperm.xlu1 %1494, %v345_v7  }
  0x3b   : > { %1333 = vmatpush3.bf16.msra.mxu0 %v1518_v18  ;;  %1392 = vmatpush3.bf16.msra.mxu1 %v1883_v47 }
  0x3c   : > { %1507 = vset.pattern.permute.xlu0 %v1642_v9  ;;  %1350 = vmatprep.subr.bf16.mxu0 %v1861_v37 }
  0x3d   : > { %361 = vperm.xlu0 %1507, %v342_v2   ;;  %1385 = vmatprep.subr.bf16.mxu1 %v1899_v57 }
  0x3e   : > { %1495 = vset.pattern.permute.xlu1 %v1640_v3 }
  0x3f   : > { %560 = vperm.xlu1 %1495, %v342_v2   ;;  %1393 = vmatpush3.bf16.msra.mxu1 %v1899_v57 }
  0x40   : > { %1386 = vmatprep.subr.bf16.mxu1 %v1907_v63 }
  0x41   : > { %366 = vperm.xlu0 %1507, %v343_v1  }
  0x43   : > { %568 = vperm.xlu1 %1495, %v344_v10   ;;  %1394 = vmatpush3.bf16.msra.mxu1 %v1907_v63 }
  0x45   : > { %371 = vperm.xlu0 %1507, %v344_v10  }
  0x47   : > { %572 = vperm.xlu1 %1495, %v345_v7  }
  0x49   : > { %381 = vperm.xlu0 %1507, %v346_v5  }
  0x4b   : > { %1497 = vset.pattern.permute.xlu1 %v1642_v9 }
  0x4c   : > { %386 = vperm.xlu1 %1497, %v347_v11  }
  0x4d   : > { %406 = vperm.xlu0 %1507, %v1801_v8  }
  0x50   : > { %1498 = vset.pattern.permute.xlu1 %v1641_v4 }
  0x51   : > { %411 = vperm.xlu0 %1507, %v352_v12   ;;  %476 = vperm.xlu1 %1498, %v346_v5  }
  0x55   : > { %421 = vperm.xlu0 %1507, %v354_v13   ;;  %1499 = vset.pattern.permute.xlu1 %v1642_v9 }
  0x56   : > { %391 = vperm.xlu1 %1499, %v348_v14  }
  0x59   : > { %1508 = vset.pattern.permute.xlu0 %v1641_v4 }
  0x5a   : > { %468 = vperm.xlu0 %1508, %v344_v10   ;;  %396 = vperm.xlu1 %1499, %v349_v6  }
  0x5e   : > { %480 = vperm.xlu0 %1508, %v347_v11   ;;  %1500 = vset.pattern.permute.xlu1 %v1641_v4 }
  0x5f   : > { %488 = vperm.xlu1 %1500, %v349_v6  }
  0x62   : > { %484 = vperm.xlu0 %1508, %v348_v14  }
  0x63   : > { %1501 = vset.pattern.permute.xlu1 %v1640_v3 }
  0x64   : > { %580 = vperm.xlu1 %1501, %v347_v11  }
  0x66   : > { %500 = vperm.xlu0 %1508, %v352_v12  }
  0x68   : > { %584 = vperm.xlu1 %1501, %v348_v14  }
  0x6a   : > { %512 = vperm.xlu0 %1508, %v355_v19  }
  0x6c   : > { %1502 = vset.pattern.permute.xlu1 %v1642_v9 }
  0x6d   : > { %401 = vperm.xlu1 %1502, %v350_v20  }
  0x6e   : > { %516 = vperm.xlu0 %1508, %v356_v21  }
  0x71   : > { %1503 = vset.pattern.permute.xlu1 %v1641_v4 }
  0x72   : > { %492 = vperm.xlu1 %1503, %v350_v20   ;;  %1513 = vset.pattern.permute.xlu0 %v1640_v3 }
  0x73   : > { %608 = vperm.xlu0 %1513, %v354_v13  }
  0x76   : > { %496 = vperm.xlu1 %1503, %v1801_v8  }
  0x77   : > { %620 = vperm.xlu0 %1513, %v357_v22  }
  0x7a   : > { %1504 = vset.pattern.permute.xlu1 %v1642_v9 }
  0x7b   : > { %416 = vperm.xlu1 %1504, %v353_v23  }
  0x7f   : > { %1505 = vset.pattern.permute.xlu1 %v1641_v4 }
  0x80   : > { %504 = vperm.xlu1 %1505, %v353_v23  }
  0x84   : > { %1506 = vset.pattern.permute.xlu1 %v1640_v3 }
  0x85   : > { %592 = vperm.xlu1 %1506, %v350_v20  }
  0x89   : > { %600 = vperm.xlu1 %1506, %v352_v12  }
  0x8d   : > { %604 = vperm.xlu1 %1506, %v353_v23  }
  0x91   : > { %1509 = vset.pattern.permute.xlu1 %v1642_v9 }
  0x92   : > { %426 = vperm.xlu1 %1509, %v355_v19  }
  0x96   : > { %1510 = vset.pattern.permute.xlu1 %v1641_v4 }
  0x97   : > { %508 = vperm.xlu1 %1510, %v354_v13  }
  0x9b   : > { %1511 = vset.pattern.permute.xlu1 %v1642_v9 }
  0x9c   : > { %431 = vperm.xlu1 %1511, %v356_v21  }
  0xa0   : > { %436 = vperm.xlu1 %1511, %v357_v22  }
  0xa4   : > { %1512 = vset.pattern.permute.xlu1 %v1641_v4  ;;  %v1915_v4 = vld [vmem:[%s2149_s5 + $0x28] sm:$0xff]  }
  0xa5   : > { %520 = vperm.xlu1 %1512, %v357_v22   ;;  %1387 = vmatprep.subr.bf16.mxu1 %v1915_v4 }
  0xa6   : > { %1395 = vmatpush3.bf16.msra.mxu1 %v1915_v4 }
  0xa9   : > { %1514 = vset.pattern.permute.xlu1 %v1640_v3 }
  0xaa   : > { %612 = vperm.xlu1 %1514, %v355_v19  }
  0xab   : > { %v461_v24 = vpop.permute.xlu1 %460  ;;  %v565_v25 = vpop.permute.xlu0 %564 }
  0xac   : > { %v527_v44 = vmul.f32 %v1863_v38, %v461_v24  ;;  %v628_v51 = vmul.f32 %v1872_v41, %v565_v25 }
  0xae   : > { %616 = vperm.xlu1 %1514, %v356_v21  }
  0xaf   : > { %v465_v27 = vpop.permute.xlu1 %464  ;;  %v1849_v28 = vpop.permute.xlu0 %576 }
  0xb0   : > { %v528_v52 = vmul.f32 %v1863_v38, %v465_v27  ;;  %v631_v26 = vmul.f32 %v1872_v41, %v1849_v28 }
  0xb3   : > { %v1851_v30 = vpop.permute.xlu0 %588 }
  0xb4   : > { %v377_v31 = vpop.permute.xlu1 %376 }
  0xb5   : > { %v446_v13 = vmul.f32 %v1874_v42, %v377_v31 }
  0xb7   : > { %v1856_v36 = vpop.permute.xlu0 %596 }
  0xb9   : > { %v473_v39 = vpop.permute.xlu1 %472 }
  0xba   : > { %v530_v10 = vmul.f32 %v1863_v38, %v473_v39 }
  0xbc   : > { %v362_v43 = vpop.permute.xlu0 %361  ;;  %v546_v15 = vadd.f32 %v530_v10, %v446_v13 }
  0xbd   : > { %v443_v45 = vmul.f32 %v1874_v42, %v362_v43  ;;  %v634_v43 = vmul.f32 %v1872_v41, %v1851_v30 }
  0xbe   : > { %v561_v46 = vpop.permute.xlu1 %560 }
  0xbf   : > { %v543_v48 = vadd.f32 %v527_v44, %v443_v45  ;;  %v627_v49 = vmul.f32 %v1872_v41, %v561_v46 }
  0xc0   : > { %v367_v50 = vpop.permute.xlu0 %366 }
  0xc1   : > { %v643_v53 = vadd.f32 %v627_v49, %v543_v48  ;;  %v444_v54 = vmul.f32 %v1874_v42, %v367_v50 }
  0xc2   : > { %v569_v55 = vpop.permute.xlu1 %568 }
  0xc3   : > { %v544_v58 = vadd.f32 %v528_v52, %v444_v54  ;;  %v666_v61 = vadd.f32 %v1894_v56, %v643_v53  ;;  %v629_v23 = vmul.f32 %v1872_v41, %v569_v55 }
  0xc4   : > { %v372_v59 = vpop.permute.xlu0 %371 }
  0xc5   : > { %v644_v60 = vadd.f32 %v628_v51, %v544_v58  ;;  %v682_v2 = vmax.f32 %v666_v61, 0.0  ;;  %v445_v16 = vmul.f32 %v1874_v42, %v372_v59 }
  0xc6   : > { %v573_v62 = vpop.permute.xlu1 %572 }
  0xc7   : > { %v667_v0 = vadd.f32 %v1894_v56, %v644_v60  ;;  %v630_v14 = vmul.f32 %v1872_v41, %v573_v62 }
  0xc8   : > { %v382_v1 = vpop.permute.xlu0 %381 }
  0xc9   : > { %v683_v3 = vmax.f32 %v667_v0, 0.0  ;;  %v646_v19 = vadd.f32 %v630_v14, %v546_v15  ;;  %v447_v20 = vmul.f32 %v1874_v42, %v382_v1 }
  0xcb   : > { %v387_v5 = vpop.permute.xlu1 %386  ;;  %v698_v6 = vpack.c.bf16 %v683_v3, %v682_v2  ;;  %v669_v27 = vadd.f32 %v1894_v56, %v646_v19 }
  0xcc   : > { %v1918_v7 = vpop.permute.xlu0 %406  ;;  %v448_v44 = vmul.f32 %v1874_v42, %v387_v5 }
  0xcd   : > { %1334 = vmatprep.mubr.msk.bf16.mxu0 %vm745_vm0, %v698_v6  ;;  %v685_v28 = vmax.f32 %v669_v27, 0.0 }
  0xd0   : > { %v477_v8 = vpop.permute.xlu1 %476  ;;  %v1923_v9 = vpop.permute.xlu0 %411 }
  0xd1   : > { %v531_v21 = vmul.f32 %v1863_v38, %v477_v8 }
  0xd3   : > { %v547_v29 = vadd.f32 %v531_v21, %v447_v20 }
  0xd4   : > { %v1926_v11 = vpop.permute.xlu0 %421 }
  0xd5   : > { %v392_v12 = vpop.permute.xlu1 %391  ;;  %v647_v46 = vadd.f32 %v631_v26, %v547_v29 }
  0xd6   : > { %v449_v58 = vmul.f32 %v1874_v42, %v392_v12 }
  0xd7   : > { %v670_v55 = vadd.f32 %v1894_v56, %v647_v46 }
  0xd9   : > { %v469_v17 = vpop.permute.xlu0 %468  ;;  %v397_v18 = vpop.permute.xlu1 %396  ;;  %v686_v1 = vmax.f32 %v670_v55, 0.0 }
  0xda   : > { %v529_v22 = vmul.f32 %v1863_v38, %v469_v17  ;;  %v450_v35 = vmul.f32 %v1874_v42, %v397_v18 }
  0xdc   : > { %v545_v24 = vadd.f32 %v529_v22, %v445_v16 }
  0xdd   : > { %v481_v25 = vpop.permute.xlu0 %480 }
  0xde   : > { %v645_v31 = vadd.f32 %v629_v23, %v545_v24  ;;  %v489_v32 = vpop.permute.xlu1 %488  ;;  %v532_v39 = vmul.f32 %v1863_v38, %v481_v25  ;;  %v453_v23 = vmul.f32 %v1874_v42, %v1923_v9 }
  0xdf   : > { %v534_v33 = vmul.f32 %v1863_v38, %v489_v32 }
  0xe0   : > { %v668_v34 = vadd.f32 %v1894_v56, %v645_v31  ;;  %v548_v51 = vadd.f32 %v532_v39, %v448_v44 }
  0xe1   : > { %v485_v45 = vpop.permute.xlu0 %484  ;;  %v550_v49 = vadd.f32 %v534_v33, %v450_v35 }
  0xe2   : > { %v684_v48 = vmax.f32 %v668_v34, 0.0  ;;  %v533_v52 = vmul.f32 %v1863_v38, %v485_v45 }
  0xe3   : > { %v581_v50 = vpop.permute.xlu1 %580  ;;  %v650_v59 = vadd.f32 %v634_v43, %v550_v49 }
  0xe4   : > { %v632_v53 = vmul.f32 %v1872_v41, %v581_v50  ;;  %v699_v54 = vpack.c.bf16 %v685_v28, %v684_v48  ;;  %v549_v61 = vadd.f32 %v533_v52, %v449_v58 }
  0xe5   : > { %v673_v2 = vadd.f32 %v1894_v56, %v650_v59  ;;  %v501_v20 = vpop.permute.xlu0 %500 }
  0xe6   : > { %v648_v30 = vadd.f32 %v632_v53, %v548_v51  ;;  %1335 = vmatmul.mubr.msk.bf16.vlgmr.msra.gmra.mrb[0].mxu0 %vm745_vm0, %v699_v54 }
  0xe7   : > { %v585_v60 = vpop.permute.xlu1 %584  ;;  %1351 = vmatpush3.bf16.msra.mxu0 %v1861_v37  ;;  %v689_v37 = vmax.f32 %v673_v2, 0.0 }
  0xe8   : > { %v671_v62 = vadd.f32 %v1894_v56, %v648_v30  ;;  %v633_v0 = vmul.f32 %v1872_v41, %v585_v60  ;;  %1352 = vmatprep.subr.bf16.mxu0 %v1869_v40 }
  0xe9   : > { %v513_v54 = vpop.permute.xlu0 %512 }
  0xea   : > { %v687_v3 = vmax.f32 %v671_v62, 0.0  ;;  %v649_v5 = vadd.f32 %v633_v0, %v549_v61  ;;  %v455_v61 = vmul.f32 %v1874_v42, %v1926_v11 }
  0xeb   : > { %1353 = vmatpush3.bf16.msra.mxu0 %v1869_v40 }
  0xec   : > { %v700_v6 = vpack.c.bf16 %v687_v3, %v686_v1  ;;  %v672_v8 = vadd.f32 %v1894_v56, %v649_v5  ;;  %v402_v10 = vpop.permute.xlu1 %401  ;;  %1354 = vmatprep.subr.bf16.mxu0 %v1883_v47  ;;  %v540_v5 = vmul.f32 %v1863_v38, %v513_v54 }
  0xed   : > { %v517_v58 = vpop.permute.xlu0 %516 }
  0xee   : > { %v688_v12 = vmax.f32 %v672_v8, 0.0  ;;  %1338 = vmatprep.mubr.msk.bf16.mxu0 %vm745_vm0, %v700_v6 }
  0xef   : > { %1355 = vmatpush3.bf16.msra.mxu0 %v1883_v47  ;;  %v452_v47 = vmul.f32 %v1874_v42, %v1918_v7 }
  0xf0   : > { %v701_v13 = vpack.c.bf16 %v689_v37, %v688_v12  ;;  %1356 = vmatprep.subr.bf16.mxu0 %v1899_v57 }
  0xf1   : > { %v493_v14 = vpop.permute.xlu1 %492 }
  0xf2   : > { %1339 = vmatmul.mubr.msk.bf16.gmra.mrb[4].mxu0 %vm745_vm0, %v701_v13  ;;  %v535_v19 = vmul.f32 %v1863_v38, %v493_v14  ;;  %v609_v60 = vpop.permute.xlu0 %608 }
  0xf3   : > { %1357 = vmatpush3.bf16.msra.mxu0 %v1899_v57  ;;  %v636_v57 = vmul.f32 %v1872_v41, %v1856_v36  ;;  %v639_v0 = vmul.f32 %v1872_v41, %v609_v60 }
  0xf4   : > { %1358 = vmatprep.subr.bf16.mxu0 %v1907_v63 }
  0xf5   : > { %v497_v40 = vpop.permute.xlu1 %496 }
  0xf6   : > { %v536_v16 = vmul.f32 %v1863_v38, %v497_v40  ;;  %v621_v3 = vpop.permute.xlu0 %620 }
  0xf7   : > { %1359 = vmatpush3.bf16.msra.mxu0 %v1907_v63  ;;  %v451_v63 = vmul.f32 %v1874_v42, %v402_v10  ;;  %v642_v12 = vmul.f32 %v1872_v41, %v621_v3 }
  0xf8   : > { %1360 = vmatprep.subr.bf16.mxu0 %v1915_v4  ;;  %v552_v17 = vadd.f32 %v536_v16, %v452_v47 }
  0xf9   : > { %v551_v24 = vadd.f32 %v535_v19, %v451_v63 }
  0xfa   : > { %v417_v15 = vpop.permute.xlu1 %416  ;;  %v652_v21 = vadd.f32 %v636_v57, %v552_v17 }
  0xfb   : > { %1361 = vmatpush3.bf16.msra.mxu0 %v1915_v4  ;;  %v537_v4 = vmul.f32 %v1863_v38, %v501_v20  ;;  %v454_v34 = vmul.f32 %v1874_v42, %v417_v15  ;;  %v541_v15 = vmul.f32 %v1863_v38, %v517_v58 }
  0xfc   : > { %v675_v25 = vadd.f32 %v1894_v56, %v652_v21 }
  0xfd   : > { %v553_v36 = vadd.f32 %v537_v4, %v453_v23 }
  0xfe   : > { %v691_v33 = vmax.f32 %v675_v25, 0.0  ;;  %v1525_v25 = vld [vmem:[%s2149_s5 + $0x30] sm:$0xff]  }
  0xff   : > { %v505_v18 = vpop.permute.xlu1 %504  ;;  %1362 = vmatprep.subr.bf16.mxu0 %v1525_v25  ;;  %1388 = vmatprep.subr.bf16.mxu1 %v1525_v25 }
 0x100   : > { %v538_v29 = vmul.f32 %v1863_v38, %v505_v18  ;;  %1363 = vmatpush3.bf16.msra.mxu0 %v1525_v25  ;;  %1396 = vmatpush3.bf16.msra.mxu1 %v1525_v25 }
 0x102   : > { %v554_v43 = vadd.f32 %v538_v29, %v454_v34 }
 0x104   : > { %v593_v22 = vpop.permute.xlu1 %592 }
 0x105   : > { %v635_v7 = vmul.f32 %v1872_v41, %v593_v22 }
 0x107   : > { %v651_v26 = vadd.f32 %v635_v7, %v551_v24 }
 0x108   : > { %v601_v27 = vpop.permute.xlu1 %600 }
 0x109   : > { %v674_v31 = vadd.f32 %v1894_v56, %v651_v26  ;;  %v637_v32 = vmul.f32 %v1872_v41, %v601_v27 }
 0x10b   : > { %v690_v9 = vmax.f32 %v674_v31, 0.0  ;;  %v653_v35 = vadd.f32 %v637_v32, %v553_v36 }
 0x10c   : > { %v605_v39 = vpop.permute.xlu1 %604 }
 0x10d   : > { %v702_v44 = vpack.c.bf16 %v691_v33, %v690_v9  ;;  %v638_v45 = vmul.f32 %v1872_v41, %v605_v39  ;;  %v676_v28 = vadd.f32 %v1894_v56, %v653_v35 }
 0x10f   : > { %v654_v46 = vadd.f32 %v638_v45, %v554_v43  ;;  %1342 = vmatprep.mubr.msk.bf16.mxu0 %vm745_vm0, %v702_v44  ;;  %v692_v50 = vmax.f32 %v676_v28, 0.0 }
 0x111   : > { %v677_v48 = vadd.f32 %v1894_v56, %v654_v46  ;;  %v427_v49 = vpop.permute.xlu1 %426 }
 0x112   : > { %v456_v6 = vmul.f32 %v1874_v42, %v427_v49 }
 0x113   : > { %v693_v51 = vmax.f32 %v677_v48, 0.0 }
 0x114   : > { %v556_v14 = vadd.f32 %v540_v5, %v456_v6 }
 0x115   : > { %v703_v52 = vpack.c.bf16 %v693_v51, %v692_v50 }
 0x116   : > { %v509_v53 = vpop.permute.xlu1 %508 }
 0x117   : > { %1343 = vmatmul.mubr.msk.bf16.gmra.mrb[8].mxu0 %vm745_vm0, %v703_v52  ;;  %v539_v30 = vmul.f32 %v1863_v38, %v509_v53 }
 0x119   : > { %v555_v62 = vadd.f32 %v539_v30, %v455_v61 }
 0x11b   : > { %v432_v55 = vpop.permute.xlu1 %431  ;;  %v655_v10 = vadd.f32 %v639_v0, %v555_v62 }
 0x11c   : > { %v457_v11 = vmul.f32 %v1874_v42, %v432_v55 }
 0x11d   : > { %v678_v16 = vadd.f32 %v1894_v56, %v655_v10 }
 0x11e   : > { %v557_v57 = vadd.f32 %v541_v15, %v457_v11 }
 0x11f   : > { %v437_v59 = vpop.permute.xlu1 %436  ;;  %v694_v63 = vmax.f32 %v678_v16, 0.0 }
 0x120   : > { %v458_v8 = vmul.f32 %v1874_v42, %v437_v59 }
 0x124   : > { %v521_v1 = vpop.permute.xlu1 %520 }
 0x125   : > { %v542_v2 = vmul.f32 %v1863_v38, %v521_v1 }
 0x127   : > { %v558_v37 = vadd.f32 %v542_v2, %v458_v8 }
 0x129   : > { %v613_v13 = vpop.permute.xlu1 %612  ;;  %v658_v47 = vadd.f32 %v642_v12, %v558_v37 }
 0x12a   : > { %v640_v40 = vmul.f32 %v1872_v41, %v613_v13 }
 0x12b   : > { %v681_v21 = vadd.f32 %v1894_v56, %v658_v47 }
 0x12c   : > { %v656_v17 = vadd.f32 %v640_v40, %v556_v14 }
 0x12d   : > { %v617_v18 = vpop.permute.xlu1 %616  ;;  %v697_v4 = vmax.f32 %v681_v21, 0.0 }
 0x12e   : > { %v679_v19 = vadd.f32 %v1894_v56, %v656_v17  ;;  %v641_v20 = vmul.f32 %v1872_v41, %v617_v18  ;;  %v1526_v41 = vld [vmem:[%s2149_s5 + $0x38] sm:$0xff]  }
 0x12f   : > { %1364 = vmatprep.subr.bf16.mxu0 %v1526_v41  ;;  %1389 = vmatprep.subr.bf16.mxu1 %v1526_v41 }
 0x130   : > { %v695_v22 = vmax.f32 %v679_v19, 0.0  ;;  %v657_v23 = vadd.f32 %v641_v20, %v557_v57  ;;  %1365 = vmatpush3.bf16.msra.mxu0 %v1526_v41  ;;  %1397 = vmatpush3.bf16.msra.mxu1 %v1526_v41 }
 0x132   : > { %v704_v42 = vpack.c.bf16 %v695_v22, %v694_v63  ;;  %v680_v24 = vadd.f32 %v1894_v56, %v657_v23  ;;  %v1266_v56 = vld [vmem:[%s2148_s4] ss:$0 sm:$0xff] }
 0x134   : > { %v696_v38 = vmax.f32 %v680_v24, 0.0  ;;  %1346 = vmatprep.mubr.msk.bf16.mxu0 %vm745_vm0, %v704_v42  ;;  %v2019_v42 = vld [vmem:[%s2150_s6] ss:$0 sm:$0xff] }
 0x136   : > { %v705_v7 = vpack.c.bf16 %v697_v4, %v696_v38 }
 0x138   : > { %1347 = vmatmul.mubr.msk.bf16.gmra.mrb[12].mxu0 %vm745_vm0, %v705_v7 }
 0x1b9   : > { %v1336_v26 = vpop.f32.mrb[0].mxu0 }
 0x1ba   : > { %v813_v27 = vadd.f32 %v1336_v26, %v1266_v56  ;;  %v804_v36 = vpop.f32.mrb[1].mxu0 }
 0x1bb   : > { %v805_v29 = vadd.f32 %v1266_v56, %v804_v36  ;;  %v1337_v31 = vpop.f32.mrb[2].mxu0 }
 0x1bc   : > { %v816_v32 = vadd.f32 %v1337_v31, %v1266_v56  ;;  %v807_v33 = vpop.f32.mrb[3].mxu0  ;;  %v869_v9 = vmax.f32 %v813_v27, 0.0 }
 0x1bd   : > { %v808_v34 = vadd.f32 %v1266_v56, %v807_v33  ;;  %v867_v39 = vmax.f32 %v805_v29, 0.0 }
 0x1be   : > { %v870_v35 = vmax.f32 %v816_v32, 0.0 }
 0x1bf   : > { %v868_v43 = vmax.f32 %v808_v34, 0.0 }
 0x1c0   : > { %v884_v44 = vpack.c.bf16 %v870_v35, %v869_v9 }
 0x1c1   : > { %v883_v45 = vpack.c.bf16 %v868_v43, %v867_v39 }
 0x1c3   : > { %1366 = vmatprep.mubr.bf16.mxu0 %v883_v45 }
 0x1c4   : > { %1367 = vmatmul.mubr.bf16.vlgmr.msra.gmra.mrb[16].mxu0 %v884_v44 }
 0x1c5   : > { %v1340_v28 = vpop.f32.mrb[4].mxu0 }
 0x1c6   : > { %v829_v46 = vadd.f32 %v1340_v28, %v1266_v56  ;;  %v820_v48 = vpop.f32.mrb[5].mxu0 }
 0x1c7   : > { %v821_v49 = vadd.f32 %v1266_v56, %v820_v48  ;;  %v1341_v50 = vpop.f32.mrb[6].mxu0 }
 0x1c8   : > { %v832_v51 = vadd.f32 %v1341_v50, %v1266_v56  ;;  %v823_v52 = vpop.f32.mrb[7].mxu0  ;;  %v873_v54 = vmax.f32 %v829_v46, 0.0 }
 0x1c9   : > { %v824_v53 = vadd.f32 %v1266_v56, %v823_v52  ;;  %v871_v58 = vmax.f32 %v821_v49, 0.0 }
 0x1ca   : > { %v874_v55 = vmax.f32 %v832_v51, 0.0 }
 0x1cb   : > { %v872_v59 = vmax.f32 %v824_v53, 0.0 }
 0x1cc   : > { %v886_v30 = vpack.c.bf16 %v874_v55, %v873_v54 }
 0x1cd   : > { %v885_v60 = vpack.c.bf16 %v872_v59, %v871_v58 }
 0x1cf   : > { %1370 = vmatprep.mubr.bf16.mxu1 %v885_v60 }
 0x1d0   : > { %1371 = vmatmul.mubr.bf16.vlgmr.msra.gmra.mrb[0].mxu1 %v886_v30 }
 0x1ea   : > { %v1344_v61 = vpop.f32.mrb[8].mxu0 }
 0x1eb   : > { %v845_v62 = vadd.f32 %v1344_v61, %v1266_v56  ;;  %v836_v0 = vpop.f32.mrb[9].mxu0 }
 0x1ec   : > { %v837_v1 = vadd.f32 %v1266_v56, %v836_v0  ;;  %v1345_v2 = vpop.f32.mrb[10].mxu0 }
 0x1ed   : > { %v848_v3 = vadd.f32 %v1345_v2, %v1266_v56  ;;  %v839_v5 = vpop.f32.mrb[11].mxu0  ;;  %v877_v8 = vmax.f32 %v845_v62, 0.0 }
 0x1ee   : > { %v840_v6 = vadd.f32 %v1266_v56, %v839_v5  ;;  %v875_v37 = vmax.f32 %v837_v1, 0.0 }
 0x1ef   : > { %v878_v10 = vmax.f32 %v848_v3, 0.0 }
 0x1f0   : > { %v876_v12 = vmax.f32 %v840_v6, 0.0 }
 0x1f1   : > { %v888_v13 = vpack.c.bf16 %v878_v10, %v877_v8 }
 0x1f2   : > { %v887_v14 = vpack.c.bf16 %v876_v12, %v875_v37 }
 0x1f4   : > { %1374 = vmatprep.mubr.bf16.mxu1 %v887_v14 }
 0x1f5   : > { %1375 = vmatmul.mubr.bf16.gmra.mrb[4].mxu1 %v888_v13 }
 0x20b   : > { %v1348_v11 = vpop.f32.mrb[12].mxu0 }
 0x20c   : > { %v861_v40 = vadd.f32 %v1348_v11, %v1266_v56  ;;  %v852_v15 = vpop.f32.mrb[13].mxu0 }
 0x20d   : > { %v853_v16 = vadd.f32 %v1266_v56, %v852_v15  ;;  %v1349_v47 = vpop.f32.mrb[14].mxu0 }
 0x20e   : > { %v864_v17 = vadd.f32 %v1349_v47, %v1266_v56  ;;  %v855_v18 = vpop.f32.mrb[15].mxu0  ;;  %v881_v19 = vmax.f32 %v861_v40, 0.0 }
 0x20f   : > { %v856_v57 = vadd.f32 %v1266_v56, %v855_v18  ;;  %v879_v63 = vmax.f32 %v853_v16, 0.0 }
 0x210   : > { %v882_v20 = vmax.f32 %v864_v17, 0.0 }
 0x211   : > { %v880_v21 = vmax.f32 %v856_v57, 0.0 }
 0x212   : > { %v890_v22 = vpack.c.bf16 %v882_v20, %v881_v19 }
 0x213   : > { %v889_v23 = vpack.c.bf16 %v880_v21, %v879_v63 }
 0x215   : > { %1378 = vmatprep.mubr.bf16.mxu1 %v889_v23  ;;  %v1091_v23 = vld [vmem:[#allocation2] sm:$0xff] }
 0x216   : > { %1379 = vmatmul.mubr.bf16.gmra.mrb[8].mxu1 %v890_v22 }
 0x297   : > { %v1368_v24 = vpop.f32.mrb[16].mxu0 }
 0x298   : > { %v1005_v4 = vadd.f32 %v1368_v24, %v2019_v42  ;;  %v996_v38 = vpop.f32.mrb[17].mxu0 }
 0x299   : > { %v997_v7 = vadd.f32 %v2019_v42, %v996_v38  ;;  %v1369_v25 = vpop.f32.mrb[18].mxu0 }
 0x29a   : > { %v1061_v41 = vmax.f32 %v1005_v4, 0.0  ;;  %v1008_v56 = vadd.f32 %v1369_v25, %v2019_v42  ;;  %v999_v26 = vpop.f32.mrb[19].mxu0 }
 0x29b   : > { %v1059_v27 = vmax.f32 %v997_v7, 0.0  ;;  %v1000_v36 = vadd.f32 %v2019_v42, %v999_v26 }
 0x29c   : > { %1077 = vst [vmem:[%s1790_s30 + $0x10] sm:$0xff] %v1061_v41  ;;  %v1062_v29 = vmax.f32 %v1008_v56, 0.0 }
 0x29d   : > { %1075 = vst [vmem:[%s1790_s30] sm:$0xff] %v1059_v27  ;;  %v1060_v31 = vmax.f32 %v1000_v36, 0.0 }
 0x29e   : > { %1078 = vst [vmem:[%s1790_s30 + $0x18] sm:$0xff] %v1062_v29 }
 0x29f   : > { %1076 = vst [vmem:[%s1790_s30 + $0x8] sm:$0xff] %v1060_v31 }
 0x2a3   : > { %v1372_v32 = vpop.f32.mrb[0].mxu1 }
 0x2a4   : > { %v1021_v33 = vadd.f32 %v1372_v32, %v2019_v42  ;;  %v1012_v34 = vpop.f32.mrb[1].mxu1 }
 0x2a5   : > { %v1013_v9 = vadd.f32 %v2019_v42, %v1012_v34  ;;  %v1373_v35 = vpop.f32.mrb[2].mxu1 }
 0x2a6   : > { %v1065_v39 = vmax.f32 %v1021_v33, 0.0  ;;  %v1024_v43 = vadd.f32 %v1373_v35, %v2019_v42  ;;  %v1015_v44 = vpop.f32.mrb[3].mxu1 }
 0x2a7   : > { %v1063_v45 = vmax.f32 %v1013_v9, 0.0  ;;  %v1016_v28 = vadd.f32 %v2019_v42, %v1015_v44 }
 0x2a8   : > { %1081 = vst [vmem:[%s1790_s30 + $0x30] sm:$0xff] %v1065_v39  ;;  %v1094_v46 = vmax.f32 %v1061_v41, %v1065_v39  ;;  %v1066_v48 = vmax.f32 %v1024_v43, 0.0 }
 0x2a9   : > { %1079 = vst [vmem:[%s1790_s30 + $0x20] sm:$0xff] %v1063_v45  ;;  %v1092_v49 = vmax.f32 %v1059_v27, %v1063_v45  ;;  %v1064_v50 = vmax.f32 %v1016_v28, 0.0 }
 0x2aa   : > { %1082 = vst [vmem:[%s1790_s30 + $0x38] sm:$0xff] %v1066_v48  ;;  %v1095_v51 = vmax.f32 %v1062_v29, %v1066_v48 }
 0x2ab   : > { %1080 = vst [vmem:[%s1790_s30 + $0x28] sm:$0xff] %v1064_v50  ;;  %v1093_v52 = vmax.f32 %v1060_v31, %v1064_v50 }
 0x2c8   : > { %v1376_v53 = vpop.f32.mrb[4].mxu1 }
 0x2c9   : > { %v1037_v54 = vadd.f32 %v1376_v53, %v2019_v42  ;;  %v1028_v55 = vpop.f32.mrb[5].mxu1 }
 0x2ca   : > { %v1029_v58 = vadd.f32 %v2019_v42, %v1028_v55  ;;  %v1377_v59 = vpop.f32.mrb[6].mxu1 }
 0x2cb   : > { %v1069_v30 = vmax.f32 %v1037_v54, 0.0  ;;  %v1040_v60 = vadd.f32 %v1377_v59, %v2019_v42  ;;  %v1031_v61 = vpop.f32.mrb[7].mxu1 }
 0x2cc   : > { %v1067_v62 = vmax.f32 %v1029_v58, 0.0  ;;  %v1032_v0 = vadd.f32 %v2019_v42, %v1031_v61 }
 0x2cd   : > { %1085 = vst [vmem:[%s1790_s30 + $0x50] sm:$0xff] %v1069_v30  ;;  %v1098_v1 = vmax.f32 %v1094_v46, %v1069_v30  ;;  %v1070_v2 = vmax.f32 %v1040_v60, 0.0 }
 0x2ce   : > { %1083 = vst [vmem:[%s1790_s30 + $0x40] sm:$0xff] %v1067_v62  ;;  %v1096_v3 = vmax.f32 %v1092_v49, %v1067_v62  ;;  %v1068_v5 = vmax.f32 %v1032_v0, 0.0 }
 0x2cf   : > { %1086 = vst [vmem:[%s1790_s30 + $0x58] sm:$0xff] %v1070_v2  ;;  %v1099_v6 = vmax.f32 %v1095_v51, %v1070_v2 }
 0x2d0   : > { %1084 = vst [vmem:[%s1790_s30 + $0x48] sm:$0xff] %v1068_v5  ;;  %v1097_v8 = vmax.f32 %v1093_v52, %v1068_v5 }
 0x2e9   : > { %v1380_v10 = vpop.f32.mrb[8].mxu1 }
 0x2ea   : > { %v1053_v37 = vadd.f32 %v1380_v10, %v2019_v42  ;;  %v1044_v12 = vpop.f32.mrb[9].mxu1 }
 0x2eb   : > { %v1045_v13 = vadd.f32 %v2019_v42, %v1044_v12  ;;  %v1381_v14 = vpop.f32.mrb[10].mxu1 }
 0x2ec   : > { %v1073_v11 = vmax.f32 %v1053_v37, 0.0  ;;  %v1056_v40 = vadd.f32 %v1381_v14, %v2019_v42  ;;  %v1047_v15 = vpop.f32.mrb[11].mxu1 }
 0x2ed   : > { %v1071_v16 = vmax.f32 %v1045_v13, 0.0  ;;  %v1048_v47 = vadd.f32 %v2019_v42, %v1047_v15 }
 0x2ee   : > { %1089 = vst [vmem:[%s1790_s30 + $0x70] sm:$0xff] %v1073_v11  ;;  %v1102_v17 = vmax.f32 %v1098_v1, %v1073_v11  ;;  %v1074_v18 = vmax.f32 %v1056_v40, 0.0 }
 0x2ef   : > { %1087 = vst [vmem:[%s1790_s30 + $0x60] sm:$0xff] %v1071_v16  ;;  %v1100_v57 = vmax.f32 %v1096_v3, %v1071_v16  ;;  %v1072_v19 = vmax.f32 %v1048_v47, 0.0 }
 0x2f0   : > { %1090 = vst [vmem:[%s1790_s30 + $0x78] sm:$0xff] %v1074_v18  ;;  %v1103_v20 = vmax.f32 %v1099_v6, %v1074_v18 }
 0x2f1   : > { %1088 = vst [vmem:[%s1790_s30 + $0x68] sm:$0xff] %v1072_v19  ;;  %v1101_v63 = vmax.f32 %v1097_v8, %v1072_v19 }
 0x2f2   : > { %v1105_v21 = vmax.f32 %v1102_v17, %v1103_v20 }
 0x2f3   : > { %v1104_v22 = vmax.f32 %v1100_v57, %v1101_v63 }
 0x2f5   : > { %v1106_v24 = vmax.f32 %v1104_v22, %v1105_v21 }
 0x2f7   : > { %v1107_v4 = vmax.f32 %v1091_v23, %v1106_v24 }
 0x2f9   : > { %1108 = vst [vmem:[#allocation2] sm:$0xff] %v1107_v4 }
 0x2fa PF: > { %p1109_p6 = scmp.eq.s32.totalorder %s1617_s28, 1 }
 0x2fc   : > { %p1110_p8 = pnand %p1109_p6, %p333_p2 }
 0x2fe   : > { %1113 = sbr.rel (%p1110_p8) target bundleno = 782 (0x30e), region = 60 }
 0x300   : > { %v1114_v42 = vld [vmem:[#allocation2] sm:$0xff] (!%p1110_p8) }
 0x301   : > { %v1115_v38 = vrot.slane (!%p1110_p8), %v1114_v42, 4 }
 0x303   : > { %v1116_v7 = vmax.f32 (!%p1110_p8), %v1114_v42, %v1115_v38 }
 0x305   : > { %v1117_v25 = vrot.slane %v1116_v7, 2 }
 0x307   : > { %v1118_v41 = vmax.f32 %v1116_v7, %v1117_v25 }
 0x309   : > { %v1119_v56 = vrot.slane %v1118_v41, 1 }
 0x30b   : > { %v1120_v26 = vmax.f32 %v1118_v41, %v1119_v56 }
 0x30d   : > { %1121 = vst [vmem:[#allocation3] sm:$0x1] %v1120_v26 }
 0x30e PF: > { %p1288_p9 = scmp.ne.s32.totalorder %s1617_s28, 1 }
 0x310   : > { %1124 = sbr.rel (%p1288_p9) target bundleno = 797 (0x31d), region = 64 }
 0x314   : > { %v1289_v27 = vld [vmem:[#allocation3] ss:$0 sm:$0xff] (!%p1288_p9) }
 0x315   : > { %1132 = vst [vmem:[%s1790_s30] sm:$0xff] (!%p1288_p9), %v1289_v27  ;;  %1133 = vst [vmem:[%s1790_s30 + $0x8] sm:$0xff] (!%p1288_p9), %v1289_v27 }
 0x316   : > { %1134 = vst [vmem:[%s1790_s30 + $0x10] sm:$0xff] (!%p1288_p9), %v1289_v27  ;;  %1135 = vst [vmem:[%s1790_s30 + $0x18] sm:$0xff] (!%p1288_p9), %v1289_v27 }
 0x317   : > { %1136 = vst [vmem:[%s1790_s30 + $0x20] sm:$0xff] %v1289_v27  ;;  %1137 = vst [vmem:[%s1790_s30 + $0x28] sm:$0xff] %v1289_v27 }
 0x318   : > { %1138 = vst [vmem:[%s1790_s30 + $0x30] sm:$0xff] %v1289_v27  ;;  %1139 = vst [vmem:[%s1790_s30 + $0x38] sm:$0xff] %v1289_v27 }
 0x319   : > { %1140 = vst [vmem:[%s1790_s30 + $0x40] sm:$0xff] %v1289_v27  ;;  %1141 = vst [vmem:[%s1790_s30 + $0x48] sm:$0xff] %v1289_v27 }
 0x31a   : > { %1142 = vst [vmem:[%s1790_s30 + $0x50] sm:$0xff] %v1289_v27  ;;  %1143 = vst [vmem:[%s1790_s30 + $0x58] sm:$0xff] %v1289_v27 }
 0x31b   : > { %1144 = vst [vmem:[%s1790_s30 + $0x60] sm:$0xff] %v1289_v27  ;;  %1145 = vst [vmem:[%s1790_s30 + $0x68] sm:$0xff] %v1289_v27 }
 0x31c   : > { %1146 = vst [vmem:[%s1790_s30 + $0x70] sm:$0xff] %v1289_v27  ;;  %1147 = vst [vmem:[%s1790_s30 + $0x78] sm:$0xff] %v1289_v27 }
 0x31d PF: > { %s1297_s23 = sshll.u32 %s1613_s27, 5  ;;  %s1293_s12 = sshll.u32 %s1621_s29, 7 }
 0x31e   : > { %s1161_s9 = sadd.s32 %s1617_s28, %s1297_s23  ;;  %s1166_s15 = sshll.u32 %s1790_s30, 4  ;;  %s2077_s15 = int_to_ptr.vmem [resolvable:$true] %s1166_s15 }
 0x31f   : > { %s1163_s13 = sadd.s32 %s1293_s12, %s1161_s9  ;;  %s2086_s8 = scalar_lea.sflag [#allocation5], %s313_s14 }
 0x320   : > { %s1294_s18 = sshll.u32 %s1163_s13, 7  ;;  %s1527_s22 = scalar_lea.vmem %s2077_s15, 2048 }
 0x321   : > { %s2082_s21 = scalar_lea.hbm %s2151_s7, %s1294_s18  ;;  %p1528_p10 = scmp.ne.s32.totalorder %s2077_s15, %s1527_s22 }
 0x322   : > { %s1643_s27 = smov [#allocation4]  }
 0x323   : > { %p1529_p11 = pnand %p1528_p10, %p1749_p5  ;;  %s1531_s28 = sshll.u32 %s1643_s27, 4  ;;  %s1532_s28 = int_to_ptr.vmem [resolvable:$false] %s1531_s28 }
 0x324   : > { %s1533_s29 = scalar_lea.vmem %s1532_s28, 4096  ;;  %p1534_p13 = scmp.lt.s32.totalorder %s2077_s15, %s1532_s28 }
 0x325   : > { %p1530_p12 = pneg %p1529_p11  ;;  %p1535_p0 = scmp.lt.s32.totalorder %s1533_s29, %s1527_s22 }
 0x327   : > { %p1536_p1 = por %p1535_p0, %p1534_p13 }
 0x329   : > { %p1537_p2 = pnand %p1536_p1, %p1530_p12 }
 0x32b   : > { %1540 = shalt.err (!%p1537_p2)
}
 0x32c   : > { %s1541_s30 = scalar_lea.hbm %s2082_s21, 2048  ;;  %s1545_s9 = scalar_lea.hbm %s2151_s7, 32768 }
 0x32d   : > { %p1542_p3 = scmp.ne.s32.totalorder %s2082_s21, %s1541_s30  ;;  %p1546_p8 = scmp.lt.u32.totalorder %s2082_s21, %s2151_s7 }
 0x32e   : > { %p1547_p9 = scmp.lt.u32.totalorder %s1545_s9, %s1541_s30  ;;  %p1549_p11 = scmp.lt.u32.totalorder %s1541_s30, %s2082_s21 }
 0x32f   : > { %p1543_p4 = pnand %p1542_p3, %p1749_p5 }
 0x330   : > { %p1548_p10 = por %p1547_p9, %p1546_p8 }
 0x331   : > { %p1544_p6 = pneg %p1543_p4 }
 0x332   : > { %p1550_p12 = por %p1549_p11, %p1548_p10 }
 0x334   : > { %p1551_p13 = pnand %p1550_p12, %p1544_p6 }
 0x336   : > { %1554 = shalt.err (!%p1551_p13)
}
 0x337   : > { %s1644_s18 = smov 128   ;;  %s1645_s19 = smov 256  }
 0x338   : > { %s1646_s20 = smov 8  }
 0x339   : > { %1398 = dma.vmem_to_hbm [thread:$0]  (%p1749_p5), %s2077_s15, 2048, %s2082_s21, %s2086_s8, %s1644_s18, %s1645_s19, %s1646_s20  }
 0x33a PF: > { %p1404_p0 = scmp.ge.s32.totalorder %s1637_s10, 2  ;;  %s1181_s22 = sand.u32 1, %s1601_s24  }
 0x33b   : > { %s1182_s27 = scalar_lea.sflag [#allocation5], %s1181_s22 }
 0x33c   : > { %p1401_p1 = pnand %p1404_p0, %p1756_p7 }
 0x33e   : > { %1596 = dma.done.wait (!%p1401_p1), %s1182_s27, 2048  }
 0x33f   : > { %1598 = vsyncadd (!%p1401_p1), %s1182_s27, 4294965248  ;;  %s20_s10 = sadd.s32 1, %s1637_s10   ;;  %s2166_s27 = sld [smem:[#allocation7_spill]] }
 0x340   : > { %p17_p2 = scmp.ge.s32.totalorder %s20_s10, 18   ;;  %s2167_s28 = sld [smem:[#allocation8_spill]] }
 0x341   : > { %s2168_s29 = sld [smem:[#allocation9_spill]]  ;;  %s2169_s30 = sld [smem:[#allocation10_spill]] }
 0x342   : > { %s2170_s8 = sld [smem:[#allocation11_spill]]  ;;  %s2171_s9 = sld [smem:[#allocation12_spill]] }
 0x343   : > { %s2172_s24 = smov %s1605_s25  ;;  %s2173_s25 = smov %s1609_s26 }
 0x344   : > { %s2174_s26 = smov %s1772_s11  ;;  %19 = sbr.rel (!%p17_p2) target bundleno = 6 (0x6), region = 99 }
 0x34b   :  { %1187 = vsyncpa [#allocation5], 1 }
 0x34c   :  { %1189 = vsyncpa [#allocation5 + $0x1], 1 }

</bundles_post_ra>
